<compile_context>
chip_gen: v5e
topology: v5e:2x2
jax: 0.10.0
libtpu: 0.0.40
codegen_flags: <defaults>
</compile_context>

<pallas_src>
import jax
import jax.numpy as jnp
from jax.experimental import pallas as pl
from jax.experimental.pallas import tpu as pltpu


def _pad_to(n: int, m: int) -> int:
    return ((n + m - 1) // m) * m


# ---------------------------------------------------------------------------
# Kernel: whole decoder forward for one batch tile.
#   Layer 1 (z -> 128 padded) on the VPU (z is tiny), layers 2-4 on the MXU
#   (bf16 inputs, f32 accumulation), ReLU on VPU, sigmoid on EUP.
# ---------------------------------------------------------------------------
def decoder_kernel(x_ref,
                   w1_ref, b1_ref,
                   w2_ref, b2_ref,
                   w3_ref, b3_ref,
                   w4_ref, b4_ref,
                   o_ref):
    x = x_ref[...].astype(jnp.float32)                     # (tb, z)

    # ---- Layer 1: rank-1 updates; avoids padding x out to 128 lanes in HBM.
    w1 = w1_ref[...].astype(jnp.float32)                   # (z, 128)
    h = b1_ref[...]                                        # (1, 128), broadcasts
    for j in range(x.shape[1]):                            # z_dim, static unroll
        h = h + x[:, j:j + 1] * w1[j:j + 1, :]
    h = jnp.maximum(h, 0.0)                                # (tb, 128)

    # ---- Layers 2..4: MXU matmuls (bf16 in, f32 accumulation).
    def linear(h, w_ref, b_ref):
        return jnp.dot(h.astype(w_ref.dtype), w_ref[...],
                       preferred_element_type=jnp.float32) + b_ref[...]

    h = jnp.maximum(linear(h, w2_ref, b2_ref), 0.0)
    h = jnp.maximum(linear(h, w3_ref, b3_ref), 0.0)
    logits = linear(h, w4_ref, b4_ref)                     # (tb, 784)

    # Sigmoid: exp + approximate reciprocal, both on the EUP slot (no VALU divide).
    o_ref[...] = pl.reciprocal(1.0 + jnp.exp(-logits), approx=True).astype(o_ref.dtype)


# ---------------------------------------------------------------------------
# Parameter construction / one-time packing.
# ---------------------------------------------------------------------------
def init_decoder_params(key, input_size=28 * 28, hidden_size=None, z_dim=2):
    """Deterministic params mirroring the PyTorch module's layer shapes.
    Returns a list of (W, b) with W of shape (out_features, in_features) —
    the same storage convention as torch.nn.Linear."""
    if hidden_size is None:
        hidden_size = [128, 64, 8]
    hidden_size = list(reversed(hidden_size))              # [8, 64, 128]
    sizes = [z_dim] + hidden_size + [input_size]           # [2, 8, 64, 128, 784]
    params = []
    for din, dout in zip(sizes[:-1], sizes[1:]):
        key, kw, kb = jax.random.split(key, 3)
        bound = 1.0 / (din ** 0.5)                         # torch Linear default range
        W = jax.random.uniform(kw, (dout, din), jnp.float32, -bound, bound)
        b = jax.random.uniform(kb, (dout,), jnp.float32, -bound, bound)
        params.append((W, b))
    return params


def pack_params(params, weight_dtype=jnp.bfloat16):
    """One-time packing (call ONCE, reuse per forward). Weight i stored as (in, out):
       * layer 0 keeps its TRUE in-dim (z, used on the VPU), out padded to 128;
       * middle layers pad both dims to 128 (zero-padding is algebraically inert
         through Linear+ReLU);
       * final layer pads in to 128 and keeps its TRUE out-dim (784) so the kernel
         writes the real output block directly (no post-kernel slice).
       Biases stay f32 (added onto the f32 accumulator)."""
    dims = [params[0][0].shape[1]] + [W.shape[0] for W, _ in params]   # [2,8,64,128,784]
    n = len(params)
    packed = []
    for idx, (W, b) in enumerate(params):
        dout, din = W.shape
        pin = din if idx == 0 else _pad_to(din, 128)
        pout = dout if idx == n - 1 else _pad_to(dout, 128)
        Wp = jnp.zeros((pin, pout), weight_dtype).at[:din, :dout].set(
            W.T.astype(weight_dtype))
        bp = jnp.zeros((1, pout), jnp.float32).at[0, :dout].set(b)
        packed.append((Wp, bp))
    return packed, dims


# ---------------------------------------------------------------------------
# Per-call wrapper: no padding/slicing of HBM arrays, just grid + BlockSpecs.
# ---------------------------------------------------------------------------
def decoder_forward(x, packed, dims, *, tb=None, out_dtype=jnp.bfloat16):
    B = x.shape[0]
    z, out_features = dims[0], dims[-1]
    x = x.astype(jnp.float32)

    if tb is None:
        # Tile size from B: cap at 1024 rows; keep >=2 grid steps when possible so
        # the "parallel" batch axis actually shards over v7x's two TensorCores;
        # wasted (masked) rows on the final partial tile bounded to < 8.
        n_tiles = max(2, pl.cdiv(B, 1024))
        tb = _pad_to(pl.cdiv(B, n_tiles), 8)
    tb = max(8, _pad_to(tb, 8))
    grid = (pl.cdiv(B, tb),)

    operands = [x]
    in_specs = [pl.BlockSpec((tb, z), lambda i: (i, 0))]
    for Wp, bp in packed:
        operands += [Wp, bp]
        # Constant index_map -> weights/biases stay resident in VMEM across steps.
        # (pl.Buffered(1) on these would shave ~0.3 MiB VMEM on v7x; omitted here
        #  for maximum lowering compatibility.)
        in_specs += [pl.BlockSpec(Wp.shape, lambda i: (0, 0)),
                     pl.BlockSpec(bp.shape, lambda i: (0, 0))]
    out_spec = pl.BlockSpec((tb, out_features), lambda i: (i, 0))

    flops = 2 * B * sum(di * do for di, do in zip(dims[:-1], dims[1:]))
    bytes_accessed = int(
        x.size * x.dtype.itemsize
        + sum(Wp.size * Wp.dtype.itemsize + bp.size * bp.dtype.itemsize
              for Wp, bp in packed)
        + B * out_features * jnp.dtype(out_dtype).itemsize)
    cost = pl.CostEstimate(flops=int(flops),
                           transcendentals=int(2 * B * out_features),
                           bytes_accessed=bytes_accessed)

    return pl.pallas_call(
        decoder_kernel,
        out_shape=jax.ShapeDtypeStruct((B, out_features), out_dtype),
        grid_spec=pltpu.PrefetchScalarGridSpec(
            num_scalar_prefetch=0,
            grid=grid,
            in_specs=in_specs,
            out_specs=out_spec,
        ),
        compiler_params=pltpu.CompilerParams(
            dimension_semantics=("parallel",)),   # v7x: shard batch tiles over 2 TCs
        cost_estimate=cost,
    )(*operands)


# ---------------------------------------------------------------------------
# Plain-JAX reference (f32 math, bf16-rounded weights to match kernel weight precision).
# ---------------------------------------------------------------------------
def decoder_reference(x, params, weight_dtype=jnp.bfloat16):
    h = x.astype(jnp.float32)
    n = len(params)
    for i, (W, b) in enumerate(params):
        Wq = W.astype(weight_dtype).astype(jnp.float32)
        h = h @ Wq.T + b
        if i < n - 1:
            h = jnp.maximum(h, 0.0)
    return 1.0 / (1.0 + jnp.exp(-h))


if __name__ == "__main__":
    key = jax.random.PRNGKey(0)
    k_params, k_x = jax.random.split(key)

    # Small, module-consistent shapes: batch=64, z_dim=2, output=784.
    batch, z_dim, input_size = 64, 2, 28 * 28
    params = init_decoder_params(k_params, input_size=input_size,
                                 hidden_size=[128, 64, 8], z_dim=z_dim)

    # Pre-pack ONCE (out of the per-call path).
    packed, dims = pack_params(params, weight_dtype=jnp.bfloat16)

    x = jax.random.normal(k_x, (batch, z_dim), jnp.float32)

    # Default tiling -> tb=32, grid=(2,): exercises batch tiling at small scale.
    out = decoder_forward(x, packed, dims)
    out = jax.block_until_ready(out)

    ref = decoder_reference(x, params, weight_dtype=jnp.bfloat16)
    assert out.shape == (batch, input_size), out.shape
    max_err = float(jnp.max(jnp.abs(out.astype(jnp.float32) - ref)))
    # bf16 activations into the MXU + approx reciprocal + bf16 output vs f32 ref.
    assert max_err < 2e-2, max_err

    print("KERNEL_OK")
</pallas_src>

<mosaic_0001>
module attributes {stable_mosaic.version = 11 : i64} {
  func.func @decoder_kernel(%arg0: i32, %arg1: memref<32x2xf32, #tpu.memory_space<vmem>>, %arg2: memref<2x128xbf16, #tpu.memory_space<vmem>>, %arg3: memref<1x128xf32, #tpu.memory_space<vmem>>, %arg4: memref<128x128xbf16, #tpu.memory_space<vmem>>, %arg5: memref<1x128xf32, #tpu.memory_space<vmem>>, %arg6: memref<128x128xbf16, #tpu.memory_space<vmem>>, %arg7: memref<1x128xf32, #tpu.memory_space<vmem>>, %arg8: memref<128x784xbf16, #tpu.memory_space<vmem>>, %arg9: memref<1x784xf32, #tpu.memory_space<vmem>>, %arg10: memref<32x784xbf16, #tpu.memory_space<vmem>>) attributes {dimension_semantics = [#tpu.dimension_semantics<parallel>], iteration_bounds = array<i64: 2>, scalar_prefetch = 0 : i64, scratch_operands = 0 : i64, tpu.core_type = #tpu.core_type<tc>, window_params = [{transform_indices = @transform_0, window_bounds = array<i64: 32, 2>}, {pipeline_mode = #tpu.pipeline_mode<synchronous>, transform_indices = @transform_1, window_bounds = array<i64: 2, 128>}, {pipeline_mode = #tpu.pipeline_mode<synchronous>, transform_indices = @transform_2, window_bounds = array<i64: 1, 128>}, {pipeline_mode = #tpu.pipeline_mode<synchronous>, transform_indices = @transform_3, window_bounds = array<i64: 128, 128>}, {pipeline_mode = #tpu.pipeline_mode<synchronous>, transform_indices = @transform_4, window_bounds = array<i64: 1, 128>}, {pipeline_mode = #tpu.pipeline_mode<synchronous>, transform_indices = @transform_5, window_bounds = array<i64: 128, 128>}, {pipeline_mode = #tpu.pipeline_mode<synchronous>, transform_indices = @transform_6, window_bounds = array<i64: 1, 128>}, {pipeline_mode = #tpu.pipeline_mode<synchronous>, transform_indices = @transform_7, window_bounds = array<i64: 128, 784>}, {pipeline_mode = #tpu.pipeline_mode<synchronous>, transform_indices = @transform_8, window_bounds = array<i64: 1, 784>}, {transform_indices = @transform_9, window_bounds = array<i64: 32, 784>}]} {
    %c0 = arith.constant 0 : index
    %c0_0 = arith.constant 0 : index
    %0 = vector.load %arg1[%c0, %c0_0] : memref<32x2xf32, #tpu.memory_space<vmem>>, vector<32x2xf32>
    %c0_1 = arith.constant 0 : index
    %c0_2 = arith.constant 0 : index
    %1 = vector.load %arg2[%c0_1, %c0_2] : memref<2x128xbf16, #tpu.memory_space<vmem>>, vector<2x128xbf16>
    %2 = arith.extf %1 : vector<2x128xbf16> to vector<2x128xf32>
    %c0_3 = arith.constant 0 : index
    %c0_4 = arith.constant 0 : index
    %3 = vector.load %arg3[%c0_3, %c0_4] : memref<1x128xf32, #tpu.memory_space<vmem>>, vector<1x128xf32>
    %4 = vector.extract_strided_slice %0 {offsets = [0, 0], sizes = [32, 1], strides = [1, 1]} : vector<32x2xf32> to vector<32x1xf32>
    %5 = vector.extract_strided_slice %2 {offsets = [0, 0], sizes = [1, 128], strides = [1, 1]} : vector<2x128xf32> to vector<1x128xf32>
    %6 = vector.broadcast %4 : vector<32x1xf32> to vector<32x128xf32>
    %7 = vector.broadcast %5 : vector<1x128xf32> to vector<32x128xf32>
    %8 = arith.mulf %6, %7 : vector<32x128xf32>
    %9 = vector.broadcast %3 : vector<1x128xf32> to vector<32x128xf32>
    %10 = arith.addf %9, %8 : vector<32x128xf32>
    %11 = vector.extract_strided_slice %0 {offsets = [0, 1], sizes = [32, 1], strides = [1, 1]} : vector<32x2xf32> to vector<32x1xf32>
    %12 = vector.extract_strided_slice %2 {offsets = [1, 0], sizes = [1, 128], strides = [1, 1]} : vector<2x128xf32> to vector<1x128xf32>
    %13 = vector.broadcast %11 : vector<32x1xf32> to vector<32x128xf32>
    %14 = vector.broadcast %12 : vector<1x128xf32> to vector<32x128xf32>
    %15 = arith.mulf %13, %14 : vector<32x128xf32>
    %16 = arith.addf %10, %15 : vector<32x128xf32>
    %cst = arith.constant 0.000000e+00 : f32
    %17 = vector.broadcast %cst : f32 to vector<32x128xf32>
    %18 = arith.maximumf %16, %17 : vector<32x128xf32>
    %19 = arith.truncf %18 : vector<32x128xf32> to vector<32x128xbf16>
    %c0_5 = arith.constant 0 : index
    %c0_6 = arith.constant 0 : index
    %20 = vector.load %arg4[%c0_5, %c0_6] : memref<128x128xbf16, #tpu.memory_space<vmem>>, vector<128x128xbf16>
    %cst_7 = arith.constant dense<0.000000e+00> : vector<32x128xf32>
    %21 = tpu.matmul %19, %20, %cst_7 {dimension_numbers = #tpu.dot_dimension_numbers<[1], [0], [0], [1], [0, 0, 1, 1], [], []>} : vector<32x128xbf16>, vector<128x128xbf16>, vector<32x128xf32> -> vector<32x128xf32>
    %c0_8 = arith.constant 0 : index
    %c0_9 = arith.constant 0 : index
    %22 = vector.load %arg5[%c0_8, %c0_9] : memref<1x128xf32, #tpu.memory_space<vmem>>, vector<1x128xf32>
    %23 = vector.broadcast %22 : vector<1x128xf32> to vector<32x128xf32>
    %24 = arith.addf %21, %23 : vector<32x128xf32>
    %cst_10 = arith.constant 0.000000e+00 : f32
    %25 = vector.broadcast %cst_10 : f32 to vector<32x128xf32>
    %26 = arith.maximumf %24, %25 : vector<32x128xf32>
    %27 = arith.truncf %26 : vector<32x128xf32> to vector<32x128xbf16>
    %c0_11 = arith.constant 0 : index
    %c0_12 = arith.constant 0 : index
    %28 = vector.load %arg6[%c0_11, %c0_12] : memref<128x128xbf16, #tpu.memory_space<vmem>>, vector<128x128xbf16>
    %cst_13 = arith.constant dense<0.000000e+00> : vector<32x128xf32>
    %29 = tpu.matmul %27, %28, %cst_13 {dimension_numbers = #tpu.dot_dimension_numbers<[1], [0], [0], [1], [0, 0, 1, 1], [], []>} : vector<32x128xbf16>, vector<128x128xbf16>, vector<32x128xf32> -> vector<32x128xf32>
    %c0_14 = arith.constant 0 : index
    %c0_15 = arith.constant 0 : index
    %30 = vector.load %arg7[%c0_14, %c0_15] : memref<1x128xf32, #tpu.memory_space<vmem>>, vector<1x128xf32>
    %31 = vector.broadcast %30 : vector<1x128xf32> to vector<32x128xf32>
    %32 = arith.addf %29, %31 : vector<32x128xf32>
    %cst_16 = arith.constant 0.000000e+00 : f32
    %33 = vector.broadcast %cst_16 : f32 to vector<32x128xf32>
    %34 = arith.maximumf %32, %33 : vector<32x128xf32>
    %35 = arith.truncf %34 : vector<32x128xf32> to vector<32x128xbf16>
    %c0_17 = arith.constant 0 : index
    %c0_18 = arith.constant 0 : index
    %36 = vector.load %arg8[%c0_17, %c0_18] : memref<128x784xbf16, #tpu.memory_space<vmem>>, vector<128x784xbf16>
    %cst_19 = arith.constant dense<0.000000e+00> : vector<32x784xf32>
    %37 = tpu.matmul %35, %36, %cst_19 {dimension_numbers = #tpu.dot_dimension_numbers<[1], [0], [0], [1], [0, 0, 1, 1], [], []>} : vector<32x128xbf16>, vector<128x784xbf16>, vector<32x784xf32> -> vector<32x784xf32>
    %c0_20 = arith.constant 0 : index
    %c0_21 = arith.constant 0 : index
    %38 = vector.load %arg9[%c0_20, %c0_21] : memref<1x784xf32, #tpu.memory_space<vmem>>, vector<1x784xf32>
    %39 = vector.broadcast %38 : vector<1x784xf32> to vector<32x784xf32>
    %40 = arith.addf %37, %39 : vector<32x784xf32>
    %cst_22 = arith.constant 0.000000e+00 : f32
    %41 = vector.broadcast %cst_22 : f32 to vector<32x784xf32>
    %42 = arith.subf %41, %40 : vector<32x784xf32>
    %43 = math.exp %42 : vector<32x784xf32>
    %cst_23 = arith.constant 1.000000e+00 : f32
    %44 = vector.broadcast %cst_23 : f32 to vector<32x784xf32>
    %45 = arith.addf %44, %43 : vector<32x784xf32>
    %46 = tpu.reciprocal %45 {approx = true} : vector<32x784xf32> -> vector<32x784xf32>
    %47 = arith.truncf %46 : vector<32x784xf32> to vector<32x784xbf16>
    %c0_24 = arith.constant 0 : index
    %c0_25 = arith.constant 0 : index
    %48 = vector.load %arg10[%c0_24, %c0_25] : memref<32x784xbf16, #tpu.memory_space<vmem>>, vector<32x784xbf16>
    tpu.vector_store %arg10[%c0_24, %c0_25], %47 {strides = array<i32>} : memref<32x784xbf16, #tpu.memory_space<vmem>>, vector<32x784xbf16>,
    return
  }
  func.func @transform_0(%arg0: i32) -> (i32, i32) {
    %c0_i32 = arith.constant 0 : i32
    %c0_i32_0 = arith.constant 0 : i32
    return %arg0, %c0_i32 : i32, i32
  }
  func.func @transform_1(%arg0: i32) -> (i32, i32) {
    %c0_i32 = arith.constant 0 : i32
    %c0_i32_0 = arith.constant 0 : i32
    %c0_i32_1 = arith.constant 0 : i32
    return %c0_i32, %c0_i32_0 : i32, i32
  }
  func.func @transform_2(%arg0: i32) -> (i32, i32) {
    %c0_i32 = arith.constant 0 : i32
    %c0_i32_0 = arith.constant 0 : i32
    %c0_i32_1 = arith.constant 0 : i32
    return %c0_i32, %c0_i32_0 : i32, i32
  }
  func.func @transform_3(%arg0: i32) -> (i32, i32) {
    %c0_i32 = arith.constant 0 : i32
    %c0_i32_0 = arith.constant 0 : i32
    %c0_i32_1 = arith.constant 0 : i32
    return %c0_i32, %c0_i32_0 : i32, i32
  }
  func.func @transform_4(%arg0: i32) -> (i32, i32) {
    %c0_i32 = arith.constant 0 : i32
    %c0_i32_0 = arith.constant 0 : i32
    %c0_i32_1 = arith.constant 0 : i32
    return %c0_i32, %c0_i32_0 : i32, i32
  }
  func.func @transform_5(%arg0: i32) -> (i32, i32) {
    %c0_i32 = arith.constant 0 : i32
    %c0_i32_0 = arith.constant 0 : i32
    %c0_i32_1 = arith.constant 0 : i32
    return %c0_i32, %c0_i32_0 : i32, i32
  }
  func.func @transform_6(%arg0: i32) -> (i32, i32) {
    %c0_i32 = arith.constant 0 : i32
    %c0_i32_0 = arith.constant 0 : i32
    %c0_i32_1 = arith.constant 0 : i32
    return %c0_i32, %c0_i32_0 : i32, i32
  }
  func.func @transform_7(%arg0: i32) -> (i32, i32) {
    %c0_i32 = arith.constant 0 : i32
    %c0_i32_0 = arith.constant 0 : i32
    %c0_i32_1 = arith.constant 0 : i32
    return %c0_i32, %c0_i32_0 : i32, i32
  }
  func.func @transform_8(%arg0: i32) -> (i32, i32) {
    %c0_i32 = arith.constant 0 : i32
    %c0_i32_0 = arith.constant 0 : i32
    %c0_i32_1 = arith.constant 0 : i32
    return %c0_i32, %c0_i32_0 : i32, i32
  }
  func.func @transform_9(%arg0: i32) -> (i32, i32) {
    %c0_i32 = arith.constant 0 : i32
    %c0_i32_0 = arith.constant 0 : i32
    return %arg0, %c0_i32 : i32, i32
  }
}

</mosaic_0001>

<bundles_post_ra>
// kernel: tpu_custom_call.1
= control target key start
LH: loop header
LB: loop body
LE: loop exit
PB: predicated region body
PF: predicated region fallthrough
CT: control target
= control target key end

     0   :  { %14 = vsyncpa [#allocation3], 0  ;;  %s2568_s0 = inlined_call_operand.vmem [shape: f32[64,2], index: 0, kind: input, shape index: {}]   ;;  %s2569_s1 = inlined_call_operand.vmem [shape: bf16[2,128], index: 1, kind: input, shape index: {}]   ;;  %s2570_s2 = inlined_call_operand.vmem [shape: f32[1,128], index: 2, kind: input, shape index: {}]   ;;  %s2571_s3 = inlined_call_operand.vmem [shape: bf16[128,128], index: 3, kind: input, shape index: {}]   ;;  %s2572_s4 = inlined_call_operand.vmem [shape: f32[1,128], index: 4, kind: input, shape index: {}]   ;;  %s2573_s5 = inlined_call_operand.vmem [shape: bf16[128,128], index: 5, kind: input, shape index: {}]   ;;  %s2574_s6 = inlined_call_operand.vmem [shape: f32[1,128], index: 6, kind: input, shape index: {}]   ;;  %s2575_s7 = inlined_call_operand.vmem [shape: bf16[128,784], index: 7, kind: input, shape index: {}]   ;;  %s2576_s8 = inlined_call_operand.vmem [shape: f32[1,784], index: 8, kind: input, shape index: {}]   ;;  %s2577_s9 = inlined_call_operand.hbm [shape: bf16[64,784], index: 9, kind: output, shape index: {}]  }
   0x1   :  { %16 = vsyncpa [#allocation3 + $0x1], 0  ;;  %s2004_s30 = smov 0   ;;  %s2006_s10 = smov 0  }
   0x2   :  { %s2008_s11 = smov 0   ;;  %s2010_s12 = smov 0  }
   0x3 LB: > { %s2025_s13 = sadd.s32 4294967295, %s1948_s12   ;;  %s1343_s14 = sadd.s32 4294967294, %s1948_s12   ;;  %s1948_s12 = sphi %s2010_s12, %s2583_s12   ;;  %s1944_s11 = sphi %s2008_s11, %s2582_s11   ;;  %s1940_s10 = sphi %s2006_s10, %s2581_s10   ;;  %s1936_s30 = sphi %s2004_s30, %s2580_s30  }
   0x4   : > { %s2029_s15 = sadd.s32 1, %s1948_s12   ;;  %s223_s16 = sadd.s32 1, %s1944_s11 }
   0x5   : > { %s220_s17 = ssub.s32 %s1948_s12, %s2029_s15  ;;  %p233_p0 = scmp.ne.s32.totalorder %s1944_s11, %s1940_s10 }
   0x6   : > { %p221_p1 = scmp.eq.s32.totalorder %s220_s17, 0  ;;  %p234_p2 = scmp.eq.s32.totalorder %s2025_s13, 1 }
   0x7   : > { %p239_p3 = scmp.ne.s32.totalorder %s1940_s10, %s1936_s30  ;;  %p240_p4 = scmp.eq.s32.totalorder %s1343_s14, 1 }
   0x8   : > { %s2040_s18 = scalar_select %p221_p1, %s1944_s11, %s223_s16  }
   0x9   : > { %p2042_p5 = por %p234_p2, %p233_p0  ;;  %p2046_p6 = por %p240_p4, %p239_p3 }
   0xa   : > { %p1346_p7 = scmp.ge.s32.totalorder %s1948_s12, 1  ;;  %p291_p8 = scmp.lt.s32.totalorder %s1948_s12, 3 }
   0xc   : > { %p292_p9 = pnand %p1346_p7, %p291_p8 }
   0xd   : > { %s1347_s21 = sshll.u32 (!%p292_p9), %s2025_s13, 2  ;;  %s324_s28 = sand.u32 (!%p292_p9), 1, %s1940_s10  }
   0xe   : > { %295 = sbr.rel (%p292_p9) target bundleno = 655 (0x28f), region = 56  ;;  %p328_p10 = scmp.lt.s32.totalorder (!%p292_p9), %s1347_s21, 7 }
   0xf   : > { %s1723_s16 = smul.u32 (!%p292_p9), 112, %s2025_s13  ;;  %s1265_s13 = scalar_lea.sflag (!%p292_p9), [#allocation3], %s324_s28 }
  0x13   : > { %v1649_v0 = vld [vmem:[%s2571_s3 + $0x38] sm:$0xff]  ;;  %v1950_v1 = vmov 1   ;;  %v1951_v2 = vmov 0   ;;  %v1648_v3 = vld [vmem:[%s2571_s3 + $0x30] sm:$0xff]  ;;  %s2585_s21 = smov (!%p328_p10, %s1347_s21), 7  ;;  %v1647_v4 = vld [vmem:[%s2571_s3 + $0x28] sm:$0xff] }
  0x14   : > { %1768 = vset.pattern.permute.xlu1 %v1950_v1  ;;  %1767 = vset.pattern.permute.xlu0 %v1951_v2  ;;  %s1348_s26 = sshll.u32 %s2585_s21, 3  ;;  %v1646_v7 = vld [vmem:[%s2571_s3 + $0x20] sm:$0xff]  ;;  %v1645_v10 = vld [vmem:[%s2571_s3 + $0x18] sm:$0xff]  ;;  %v1644_v11 = vld [vmem:[%s2571_s3 + $0x10] sm:$0xff]  ;;  %vm1250_vm0 = vcmask 125952   ;;  %s1277_s21 = scalar_lea.hbm %s2577_s9, %s1723_s16 }
  0x15   : > { %1769 = vset.pattern.permute.xlu2 %v1951_v2  ;;  %472 = vmatpush.bf16.msra.mxu0 %v1649_v0  ;;  %s331_s29 = scalar_lea.vmem %s2568_s0, %s1348_s26  ;;  %v1643_v12 = vld [vmem:[%s2571_s3 + $0x8] sm:$0xff]  ;;  %v1642_v13 = vld [vmem:[%s2571_s3] sm:$0xff]  ;;  %v1657_v22 = vld [vmem:[%s2573_s5 + $0x38] sm:$0xff]  ;;  %s1280_s24 = sshll.u32 %s1277_s21, 4  ;;  %s1281_s24 = int_to_ptr.hbm [resolvable:$true] %s1280_s24 }
  0x16   : > { %v334_v5 = vld [vmem:[%s331_s29] sm:$0xff]  ;;  %v336_v6 = vld [vmem:[%s331_s29 + $0x10] sm:$0xff]  ;;  %v335_v8 = vld [vmem:[%s331_s29 + $0x8] sm:$0xff]  ;;  %565 = vmatpush.bf16.msra.mxu1 %v1657_v22  ;;  %s1900_s25 = sshra.s32 %s1281_s24, 4  ;;  %s1906_s16 = scalar_lea.hbm %s2577_s9, 224  ;;  %s1901_s25 = int_to_ptr.hbm [resolvable:$true] %s1900_s25 }
  0x17   : > { %374 = vperm.xlu1 %1768, %v334_v5   ;;  %343 = vperm.xlu0 %1767, %v334_v5   ;;  %v337_v9 = vld [vmem:[%s331_s29 + $0x18] sm:$0xff]  ;;  %v338_v14 = vld [vmem:[%s2569_s1] sm:$0x1]  ;;  %v1656_v24 = vld [vmem:[%s2573_s5 + $0x30] sm:$0xff]  ;;  %s2482_s29 = smul.u32 112, %s324_s28  ;;  %s1902_s26 = scalar_lea.hbm %s1901_s25, 112 }
  0x18   : > { %353 = vperm.xlu2 %1769, %v336_v6   ;;  %v339_v15 = vunpack.c.l.bf16 %v338_v14  ;;  %v1771_v20 = vld [vmem:[%s2570_s2] ss:$0 sm:$0xff]  ;;  %v1655_v30 = vld [vmem:[%s2573_s5 + $0x28] sm:$0xff]  ;;  %v1653_v53 = vld [vmem:[%s2573_s5 + $0x18] sm:$0xff]  ;;  %p1903_p11 = scmp.ne.s32.totalorder %s1901_s25, %s1902_s26  ;;  %p1907_p0 = scmp.lt.s32.totalorder %s1901_s25, %s2577_s9 }
  0x19   : > { %473 = vmatpush.bf16.msra.mxu0 %v1648_v3  ;;  %v1654_v35 = vld [vmem:[%s2573_s5 + $0x20] sm:$0xff]  ;;  %v1652_v54 = vld [vmem:[%s2573_s5 + $0x10] sm:$0xff]  ;;  %v1651_v55 = vld [vmem:[%s2573_s5 + $0x8] sm:$0xff]  ;;  %s2489_s14 = scalar_lea.vmem [#allocation2], %s2482_s29  ;;  %p1908_p1 = scmp.lt.s32.totalorder %s1906_s16, %s1902_s26 }
  0x1a   : > { %v361_v16 = vperm.slane %v339_v15, 0  ;;  %v389_v19 = vperm.slane %v339_v15, 1  ;;  %566 = vmatpush.bf16.msra.mxu1 %v1656_v24  ;;  %v1650_v56 = vld [vmem:[%s2573_s5] sm:$0xff]  ;;  %v1611_v57 = vld [vmem:[%s2575_s7 + $0x188] sm:$0xf]  ;;  %s1278_s23 = sshll.u32 %s2489_s14, 4  ;;  %p1904_p12 = pnand %p1903_p11, %p2042_p5  ;;  %s1279_s23 = int_to_ptr.vmem [resolvable:$true] %s1278_s23 }
  0x1b   : > { %v1710_v58 = vld [vmem:[%s2575_s7 + $0x1a0] sm:$0xf0]  ;;  %v1707_v59 = vld [vmem:[%s2575_s7 + $0x18c] sm:$0xf]  ;;  %v1613_v62 = vld [vmem:[%s2575_s7 + $0x1a4] sm:$0xf0]  ;;  %p1909_p2 = por %p1908_p1, %p1907_p0 }
  0x1c   : > { %v1612_v61 = vor.u32 %v1710_v58, %v1611_v57  ;;  %v1619_v63 = vld [vmem:[%s2575_s7 + $0x190] sm:$0xf]  ;;  %v1711_v0 = vld [vmem:[%s2575_s7 + $0x1a8] sm:$0xf0]  ;;  %v1708_v3 = vld [vmem:[%s2575_s7 + $0x194] sm:$0xf]  ;;  %p1905_p13 = pneg %p1904_p12 }
  0x1d   : > { %474 = vmatpush.bf16.msra.mxu0 %v1647_v4  ;;  %v1620_v2 = vor.u32 %v1711_v0, %v1619_v63  ;;  %v1621_v4 = vld [vmem:[%s2575_s7 + $0x1ac] sm:$0xf0]  ;;  %v1704_v14 = vld [vmem:[%s2575_s7 + $0x170] sm:$0xf0]  ;;  %v1557_v22 = vld [vmem:[%s2575_s7 + $0x134] sm:$0xf0] }
  0x1e   : > { %567 = vmatpush.bf16.msra.mxu1 %v1655_v30  ;;  %v1583_v5 = vld [vmem:[%s2575_s7 + $0x150] sm:$0xf]  ;;  %958 = vmatpush.bf16.msra.mxu2 %v1612_v61  ;;  %v1563_v24 = vld [vmem:[%s2575_s7 + $0x120] sm:$0xf]  ;;  %v1682_v57 = vld [vmem:[%s2575_s7 + $0xc0] sm:$0xf0]  ;;  %p1910_p3 = pnand %p1909_p2, %p1905_p13 }
  0x1f   : > { %378 = vperm.xlu1 %1768, %v335_v8   ;;  %348 = vperm.xlu0 %1767, %v335_v8   ;;  %v1700_v8 = vld [vmem:[%s2575_s7 + $0x154] sm:$0xf]  ;;  %v1565_v30 = vld [vmem:[%s2575_s7 + $0x13c] sm:$0xf0]  ;;  %v1679_v58 = vld [vmem:[%s2575_s7 + $0xac] sm:$0xf] }
  0x20   : > { %358 = vperm.xlu2 %1769, %v337_v9   ;;  %v1507_v61 = vld [vmem:[%s2575_s7 + $0xb0] sm:$0xf] }
  0x21   : > { %475 = vmatpush.bf16.msra.mxu0 %v1646_v7  ;;  %v1703_v7 = vld [vmem:[%s2575_s7 + $0x168] sm:$0xf0] }
  0x22   : > { %568 = vmatpush.bf16.msra.mxu1 %v1654_v35  ;;  %v1686_v35 = vld [vmem:[%s2575_s7 + $0xe4] sm:$0xf] }
  0x25   : > { %476 = vmatpush.bf16.msra.mxu0 %v1645_v10  ;;  %v1772_v10 = vld [vmem:[%s2572_s4] ss:$0 sm:$0xff] }
  0x26   : > { %569 = vmatpush.bf16.msra.mxu1 %v1653_v53 }
  0x27   : > { %386 = vperm.xlu1 %1768, %v337_v9   ;;  %1770 = vset.pattern.permute.xlu0 %v1950_v1  ;;  %v1616_v1 = vor.u32 %v1707_v59, %v1613_v62  ;;  %v1585_v9 = vld [vmem:[%s2575_s7 + $0x16c] sm:$0xf0]  ;;  %v1683_v62 = vld [vmem:[%s2575_s7 + $0xc8] sm:$0xf0] }
  0x28   : > { %382 = vperm.xlu0 %1770, %v336_v6   ;;  %v1624_v6 = vor.u32 %v1708_v3, %v1621_v4  ;;  %v1508_v0 = vor.u32 %v1683_v62, %v1507_v61  ;;  %v1471_v4 = vld [vmem:[%s2575_s7 + $0x70] sm:$0xf]  ;;  %v1573_v62 = vld [vmem:[%s2575_s7 + $0x144] sm:$0xf0] }
  0x29   : > { %477 = vmatpush.bf16.msra.mxu0 %v1644_v11  ;;  %977 = vmatpush.bf16.msra.mxu3 %v1616_v1  ;;  %v1584_v11 = vor.u32 %v1703_v7, %v1583_v5  ;;  %v1680_v1 = vld [vmem:[%s2575_s7 + $0xb4] sm:$0xf]  ;;  %v1675_v5 = vld [vmem:[%s2575_s7 + $0x88] sm:$0xf0] }
  0x2a   : > { %570 = vmatpush.bf16.msra.mxu1 %v1652_v54  ;;  %v1472_v7 = vor.u32 %v1675_v5, %v1471_v4  ;;  %v1691_v4 = vld [vmem:[%s2575_s7 + $0x108] sm:$0xf0]  ;;  %v1688_v5 = vld [vmem:[%s2575_s7 + $0xf4] sm:$0xf] }
  0x2b   : > { %959 = vmatpush.bf16.msra.mxu2 %v1584_v11 }
  0x2d   : > { %478 = vmatpush.bf16.msra.mxu0 %v1643_v12  ;;  %v1588_v12 = vor.u32 %v1700_v8, %v1585_v9  ;;  %v1473_v8 = vld [vmem:[%s2575_s7 + $0x8c] sm:$0xf0]  ;;  %v1479_v9 = vld [vmem:[%s2575_s7 + $0x78] sm:$0xf] }
  0x2e   : > { %571 = vmatpush.bf16.msra.mxu1 %v1651_v55 }
  0x2f   : > { %978 = vmatpush.bf16.msra.mxu3 %v1588_v12 }
  0x31   : > { %479 = vmatpush.bf16.msra.mxu0 %v1642_v13  ;;  %v1591_v13 = vld [vmem:[%s2575_s7 + $0x158] sm:$0xf] }
  0x32   : > { %572 = vmatpush.bf16.msra.mxu1 %v1650_v56  ;;  %v1592_v15 = vor.u32 %v1704_v14, %v1591_v13  ;;  %v1499_v56 = vld [vmem:[%s2575_s7 + $0xa8] sm:$0xf]  ;;  %v1673_v13 = vld [vmem:[%s2575_s7 + $0x7c] sm:$0xf]  ;;  %v1481_v14 = vld [vmem:[%s2575_s7 + $0x94] sm:$0xf0] }
  0x33   : > { %v1500_v59 = vor.u32 %v1682_v57, %v1499_v56 }
  0x35   : > { %996 = vmatpush.bf16.msrb.mxu0 %v1620_v2  ;;  %v1509_v2 = vld [vmem:[%s2575_s7 + $0xcc] sm:$0xf0] }
  0x36   : > { %1015 = vmatpush.bf16.msrb.mxu1 %v1624_v6  ;;  %v1512_v3 = vor.u32 %v1680_v1, %v1509_v2  ;;  %v1672_v6 = vld [vmem:[%s2575_s7 + $0x74] sm:$0xf]  ;;  %v1699_v1 = vld [vmem:[%s2575_s7 + $0x148] sm:$0xf0] }
  0x37   : > { %v1476_v11 = vor.u32 %v1672_v6, %v1473_v8  ;;  %v1551_v8 = vld [vmem:[%s2575_s7 + $0xf8] sm:$0xf] }
  0x39   : > { %997 = vmatpush.bf16.msrb.mxu0 %v1592_v15  ;;  %v1484_v15 = vor.u32 %v1673_v13, %v1481_v14  ;;  %v1684_v13 = vld [vmem:[%s2575_s7 + $0xd0] sm:$0xf0]  ;;  %v1681_v14 = vld [vmem:[%s2575_s7 + $0xbc] sm:$0xf] }
  0x72   : > { %v354_v23 = vpop.permute.xlu2 %353 }
  0x73   : > { %v364_v39 = vmul.f32 %v361_v16, %v354_v23 }
  0x75   : > { %v371_v44 = vadd.f32 %v1771_v20, %v364_v39  ;;  %v1690_v39 = vld [vmem:[%s2575_s7 + $0x100] sm:$0xf0] }
  0x7a   : > { %v359_v36 = vpop.permute.xlu2 %358 }
  0x7b   : > { %v365_v40 = vmul.f32 %v361_v16, %v359_v36  ;;  %v1529_v36 = vld [vmem:[%s2575_s7 + $0xfc] sm:$0xf0] }
  0x7d   : > { %v372_v45 = vadd.f32 %v1771_v20, %v365_v40  ;;  %v1687_v40 = vld [vmem:[%s2575_s7 + $0xec] sm:$0xf] }
  0x89   : > { %v375_v17 = vpop.permute.xlu1 %374  ;;  %v344_v18 = vpop.permute.xlu0 %343 }
  0x8a   : > { %v362_v21 = vmul.f32 %v361_v16, %v344_v18  ;;  %v390_v25 = vmul.f32 %v389_v19, %v375_v17  ;;  %v1593_v17 = vld [vmem:[%s2575_s7 + $0x174] sm:$0xf0] }
  0x8b   : > { %v1555_v18 = vld [vmem:[%s2575_s7 + $0x118] sm:$0xf] }
  0x8c   : > { %v369_v26 = vadd.f32 %v1771_v20, %v362_v21  ;;  %v1693_v21 = vld [vmem:[%s2575_s7 + $0x11c] sm:$0xf] }
  0x8e   : > { %v394_v33 = vadd.f32 %v390_v25, %v369_v26  ;;  %v1697_v25 = vld [vmem:[%s2575_s7 + $0x138] sm:$0xf0]  ;;  %v1694_v26 = vld [vmem:[%s2575_s7 + $0x124] sm:$0xf] }
  0x90   : > { %v398_v37 = vmax.f32 %v394_v33, 0.0 }
  0x91   : > { %v379_v27 = vpop.permute.xlu1 %378  ;;  %v349_v28 = vpop.permute.xlu0 %348 }
  0x92   : > { %v363_v29 = vmul.f32 %v361_v16, %v349_v28  ;;  %v391_v31 = vmul.f32 %v389_v19, %v379_v27  ;;  %v1701_v16 = vld [vmem:[%s2575_s7 + $0x15c] sm:$0xf]  ;;  %v1560_v28 = vor.u32 %v1693_v21, %v1557_v22  ;;  %v1451_v21 = vld [vmem:[%s2575_s7 + $0x40] sm:$0xf] }
  0x93   : > { %v1669_v22 = vld [vmem:[%s2575_s7 + $0x58] sm:$0xf0] }
  0x94   : > { %v370_v32 = vadd.f32 %v1771_v20, %v363_v29  ;;  %v1696_v20 = vld [vmem:[%s2575_s7 + $0x130] sm:$0xf0]  ;;  %v1564_v29 = vor.u32 %v1697_v25, %v1563_v24  ;;  %979 = vmatpush.bf16.msra.mxu3 %v1560_v28  ;;  %v1452_v24 = vor.u32 %v1669_v22, %v1451_v21  ;;  %v1666_v25 = vld [vmem:[%s2575_s7 + $0x44] sm:$0xf]  ;;  %v1415_v28 = vld [vmem:[%s2575_s7] sm:$0xf] }
  0x95   : > { %v1556_v23 = vor.u32 %v1696_v20, %v1555_v18  ;;  %v1665_v18 = vld [vmem:[%s2575_s7 + $0x3c] sm:$0xf]  ;;  %v1445_v20 = vld [vmem:[%s2575_s7 + $0x54] sm:$0xf0]  ;;  %v1487_v22 = vld [vmem:[%s2575_s7 + $0x80] sm:$0xf] }
  0x96   : > { %v395_v34 = vadd.f32 %v391_v31, %v370_v32  ;;  %v1527_v31 = vld [vmem:[%s2575_s7 + $0xe0] sm:$0xf]  ;;  %v1689_v32 = vld [vmem:[%s2575_s7 + $0xf8] sm:$0xf0]  ;;  %998 = vmatpush.bf16.msrb.mxu0 %v1564_v29 }
  0x97   : > { %960 = vmatpush.bf16.msra.mxu2 %v1556_v23  ;;  %v1448_v23 = vor.u32 %v1665_v18, %v1445_v20  ;;  %v1661_v29 = vld [vmem:[%s2575_s7 + $0x18] sm:$0xf0] }
  0x98   : > { %v399_v38 = vmax.f32 %v395_v34, 0.0  ;;  %v1568_v34 = vor.u32 %v1694_v26, %v1565_v30  ;;  %v1453_v26 = vld [vmem:[%s2575_s7 + $0x5c] sm:$0xf0]  ;;  %v1658_v30 = vld [vmem:[%s2575_s7 + $0x4] sm:$0xf] }
  0x99   : > { %v387_v42 = vpop.permute.xlu1 %386  ;;  %v1685_v18 = vld [vmem:[%s2575_s7 + $0xd8] sm:$0xf0] }
  0x9a   : > { %v402_v41 = vpack.c.bf16 %v399_v38, %v398_v37  ;;  %v383_v43 = vpop.permute.xlu0 %382  ;;  %v393_v46 = vmul.f32 %v389_v19, %v387_v42  ;;  %v1535_v37 = vld [vmem:[%s2575_s7 + $0xe8] sm:$0xf]  ;;  %v1528_v42 = vor.u32 %v1689_v32, %v1527_v31  ;;  %v1416_v31 = vor.u32 %v1661_v29, %v1415_v28  ;;  %v1417_v32 = vld [vmem:[%s2575_s7 + $0x1c] sm:$0xf0]  ;;  %v1678_v28 = vld [vmem:[%s2575_s7 + $0xa0] sm:$0xf0] }
  0x9b   : > { %v392_v47 = vmul.f32 %v389_v19, %v383_v43  ;;  %v1596_v19 = vor.u32 %v1701_v16, %v1593_v17  ;;  %v1443_v16 = vld [vmem:[%s2575_s7 + $0x38] sm:$0xf]  ;;  %v1668_v17 = vld [vmem:[%s2575_s7 + $0x50] sm:$0xf0]  ;;  %v1773_v29 = vld [vmem:[%s2574_s6] ss:$0 sm:$0xff] }
  0x9c   : > { %480 = vmatmul.bf16.vlgmr.msra.gmra.mxu0 %v402_v41  ;;  %v397_v48 = vadd.f32 %v393_v46, %v372_v45  ;;  %v1537_v41 = vld [vmem:[%s2575_s7 + $0x104] sm:$0xf0]  ;;  %v1532_v45 = vor.u32 %v1686_v35, %v1529_v36  ;;  %v1536_v46 = vor.u32 %v1690_v39, %v1535_v37  ;;  %961 = vmatpush.bf16.msra.mxu2 %v1528_v42  ;;  %v1659_v37 = vld [vmem:[%s2575_s7 + $0xc] sm:$0xf]  ;;  %v1709_v42 = vld [vmem:[%s2575_s7 + $0x19c] sm:$0xf] }
  0x9d   : > { %v396_v49 = vadd.f32 %v392_v47, %v371_v44  ;;  %1016 = vmatpush.bf16.msrb.mxu1 %v1596_v19  ;;  %v1540_v47 = vor.u32 %v1687_v40, %v1537_v41  ;;  %v1444_v19 = vor.u32 %v1668_v17, %v1443_v16  ;;  %v1420_v35 = vor.u32 %v1658_v30, %v1417_v32  ;;  %v1627_v40 = vld [vmem:[%s2575_s7 + $0x198] sm:$0xf]  ;;  %v1712_v41 = vld [vmem:[%s2575_s7 + $0x1b0] sm:$0xf0]  ;;  %v1523_v17 = vld [vmem:[%s2575_s7 + $0xc0] sm:$0xf] }
  0x9e   : > { %v401_v50 = vmax.f32 %v397_v48, 0.0  ;;  %980 = vmatpush.bf16.msra.mxu3 %v1532_v45  ;;  %999 = vmatpush.bf16.msrb.mxu0 %v1536_v46  ;;  %v1635_v45 = vld [vmem:[%s2575_s7 + $0x1a0] sm:$0xf]  ;;  %v1713_v46 = vld [vmem:[%s2575_s7 + $0x1b8] sm:$0xf0]  ;;  %v1524_v21 = vor.u32 %v1685_v18, %v1523_v17 }
  0x9f   : > { %v400_v51 = vmax.f32 %v396_v49, 0.0  ;;  %v1517_v16 = vld [vmem:[%s2575_s7 + $0xd4] sm:$0xf0]  ;;  %v1459_v32 = vld [vmem:[%s2575_s7 + $0x48] sm:$0xf] }
  0xa0   : > { %962 = vmatpush.bf16.msra.mxu2 %v1500_v59  ;;  %v1698_v59 = vld [vmem:[%s2575_s7 + $0x140] sm:$0xf0]  ;;  %v1520_v20 = vor.u32 %v1681_v14, %v1517_v16 }
  0xa1   : > { %v403_v52 = vpack.c.bf16 %v401_v50, %v400_v51  ;;  %1017 = vmatpush.bf16.msrb.mxu1 %v1568_v34  ;;  %v1662_v34 = vld [vmem:[%s2575_s7 + $0x20] sm:$0xf0] }
  0xa2   : > { %1000 = vmatpush.bf16.msrb.mxu0 %v1508_v0  ;;  %v1579_v0 = vld [vmem:[%s2575_s7 + $0x130] sm:$0xf] }
  0xa3   : > { %v1580_v2 = vor.u32 %v1699_v1, %v1579_v0 }
  0xa4   : > { %963 = vmatpush.bf16.msra.mxu2 %v1472_v7  ;;  %v1545_v7 = vld [vmem:[%s2575_s7 + $0x10c] sm:$0xf0] }
  0xa5   : > { %1018 = vmatpush.bf16.msrb.mxu1 %v1540_v47 }
  0xa8   : > { %964 = vmatpush.bf16.msra.mxu2 %v1444_v19 }
  0xa9   : > { %1019 = vmatpush.bf16.msrb.mxu1 %v1512_v3  ;;  %v1543_v3 = vld [vmem:[%s2575_s7 + $0xf0] sm:$0xf] }
  0xaa   : > { %v1544_v6 = vor.u32 %v1691_v4, %v1543_v3 }
  0xac   : > { %485 = vmatmul.bf16.gmra.mxu0 %v403_v52  ;;  %965 = vmatpush.bf16.msra.mxu2 %v1416_v31 }
  0xad   : > { %1020 = vmatpush.bf16.msrb.mxu1 %v1484_v15 }
 0x119   : > { %v481_v60 = vpop.f32.mrf.mxu0 }
 0x11a   : > { %v482_v27 = vadd.f32 %v1772_v10, %v481_v60  ;;  %v1501_v60 = vld [vmem:[%s2575_s7 + $0xc4] sm:$0xf0] }
 0x11b   : > { %v1504_v63 = vor.u32 %v1679_v58, %v1501_v60  ;;  %v1571_v58 = vld [vmem:[%s2575_s7 + $0x128] sm:$0xf]  ;;  %v1695_v60 = vld [vmem:[%s2575_s7 + $0x12c] sm:$0xf] }
 0x11c   : > { %v491_v43 = vmax.f32 %v482_v27, 0.0  ;;  %v1456_v27 = vor.u32 %v1666_v25, %v1453_v26  ;;  %v1572_v61 = vor.u32 %v1698_v59, %v1571_v58  ;;  %v1489_v26 = vld [vmem:[%s2575_s7 + $0x9c] sm:$0xf0] }
 0x11d   : > { %981 = vmatpush.bf16.msra.mxu3 %v1504_v63  ;;  %v1576_v63 = vor.u32 %v1695_v60, %v1573_v62 }
 0x11e   : > { %1021 = vmatpush.bf16.msrb.mxu1 %v1456_v27  ;;  %v1495_v27 = vld [vmem:[%s2575_s7 + $0x88] sm:$0xf] }
 0x11f   : > { %v1496_v31 = vor.u32 %v1678_v28, %v1495_v27 }
 0x121   : > { %v483_v33 = vpop.f32.mrf.mxu0  ;;  %982 = vmatpush.bf16.msra.mxu3 %v1476_v11 }
 0x122   : > { %v484_v38 = vadd.f32 %v1772_v10, %v483_v33  ;;  %v1423_v33 = vld [vmem:[%s2575_s7 + $0x8] sm:$0xf] }
 0x123   : > { %v1424_v36 = vor.u32 %v1662_v34, %v1423_v33  ;;  %v1670_v33 = vld [vmem:[%s2575_s7 + $0x60] sm:$0xf0]  ;;  %v1667_v34 = vld [vmem:[%s2575_s7 + $0x4c] sm:$0xf] }
 0x124   : > { %v492_v44 = vmax.f32 %v484_v38, 0.0  ;;  %v1425_v38 = vld [vmem:[%s2575_s7 + $0x24] sm:$0xf0] }
 0x125   : > { %983 = vmatpush.bf16.msra.mxu3 %v1448_v23  ;;  %v1428_v39 = vor.u32 %v1659_v37, %v1425_v38  ;;  %v1677_v23 = vld [vmem:[%s2575_s7 + $0x98] sm:$0xf0]  ;;  %v1671_v37 = vld [vmem:[%s2575_s7 + $0x68] sm:$0xf0]  ;;  %v1460_v38 = vor.u32 %v1670_v33, %v1459_v32 }
 0x126   : > { %v495_v48 = vpack.c.bf16 %v492_v44, %v491_v43  ;;  %v1628_v43 = vor.u32 %v1712_v41, %v1627_v40  ;;  %v1629_v44 = vld [vmem:[%s2575_s7 + $0x1b4] sm:$0xf0]  ;;  %v1488_v25 = vor.u32 %v1677_v23, %v1487_v22  ;;  %v1431_v41 = vld [vmem:[%s2575_s7 + $0x10] sm:$0xf] }
 0x127   : > { %1022 = vmatpush.bf16.msrb.mxu1 %v1428_v39  ;;  %v1632_v47 = vor.u32 %v1709_v42, %v1629_v44  ;;  %v1663_v42 = vld [vmem:[%s2575_s7 + $0x28] sm:$0xf0] }
 0x128   : > { %573 = vmatmul.bf16.vlgmr.msra.gmra.mxu1 %v495_v48  ;;  %v1636_v48 = vor.u32 %v1713_v46, %v1635_v45  ;;  %1034 = vmatpush.bf16.msrb.mxu2 %v1628_v43  ;;  %v1660_v43 = vld [vmem:[%s2575_s7 + $0x14] sm:$0xf]  ;;  %v1433_v45 = vld [vmem:[%s2575_s7 + $0x2c] sm:$0xf0]  ;;  %v1439_v46 = vld [vmem:[%s2575_s7 + $0x18] sm:$0xf] }
 0x129   : > { %v486_v49 = vpop.f32.mrf.mxu0  ;;  %984 = vmatpush.bf16.msra.mxu3 %v1420_v35  ;;  %v1461_v35 = vld [vmem:[%s2575_s7 + $0x64] sm:$0xf0] }
 0x12a   : > { %v487_v50 = vadd.f32 %v1772_v10, %v486_v49  ;;  %v1599_v49 = vld [vmem:[%s2575_s7 + $0x160] sm:$0xf]  ;;  %v1464_v39 = vor.u32 %v1667_v34, %v1461_v35 }
 0x12b   : > { %1714 = vmatpush.bf16.msra.mxu1 %v1636_v48 }
 0x12c   : > { %v493_v53 = vmax.f32 %v487_v50, 0.0  ;;  %v1705_v50 = vld [vmem:[%s2575_s7 + $0x178] sm:$0xf0] }
 0x12d   : > { %1053 = vmatpush.bf16.msrb.mxu3 %v1632_v47  ;;  %v1664_v47 = vld [vmem:[%s2575_s7 + $0x30] sm:$0xf0] }
 0x131   : > { %v488_v51 = vpop.f32.mrf.mxu0 }
 0x132   : > { %v489_v52 = vadd.f32 %v1772_v10, %v488_v51  ;;  %v1676_v10 = vld [vmem:[%s2575_s7 + $0x90] sm:$0xf0]  ;;  %v1702_v51 = vld [vmem:[%s2575_s7 + $0x164] sm:$0xf] }
 0x133   : > { %v1480_v12 = vor.u32 %v1676_v10, %v1479_v9  ;;  %v1692_v9 = vld [vmem:[%s2575_s7 + $0x110] sm:$0xf0]  ;;  %v1548_v10 = vor.u32 %v1688_v5, %v1545_v7 }
 0x134   : > { %v494_v54 = vmax.f32 %v489_v52, 0.0  ;;  %v1600_v52 = vor.u32 %v1705_v50, %v1599_v49  ;;  %v1552_v11 = vor.u32 %v1692_v9, %v1551_v8  ;;  %v1432_v50 = vor.u32 %v1663_v42, %v1431_v41 }
 0x135   : > { %1001 = vmatpush.bf16.msrb.mxu0 %v1480_v12  ;;  %v1515_v12 = vld [vmem:[%s2575_s7 + $0xb8] sm:$0xf] }
 0x136   : > { %v496_v55 = vpack.c.bf16 %v494_v54, %v493_v53  ;;  %v1601_v53 = vld [vmem:[%s2575_s7 + $0x17c] sm:$0xf0]  ;;  %v1607_v54 = vld [vmem:[%s2575_s7 + $0x168] sm:$0xf]  ;;  %1035 = vmatpush.bf16.msrb.mxu2 %v1600_v52  ;;  %v1516_v15 = vor.u32 %v1684_v13, %v1515_v12  ;;  %v1440_v52 = vor.u32 %v1664_v47, %v1439_v46 }
 0x137   : > { %v1604_v56 = vor.u32 %v1702_v51, %v1601_v53  ;;  %v1436_v51 = vor.u32 %v1660_v43, %v1433_v45 }
 0x138   : > { %578 = vmatmul.bf16.gmra.mxu1 %v496_v55  ;;  %v1706_v55 = vld [vmem:[%s2575_s7 + $0x180] sm:$0xf0] }
 0x139   : > { %1002 = vmatpush.bf16.msrb.mxu0 %v1452_v24  ;;  %v1608_v57 = vor.u32 %v1706_v55, %v1607_v54  ;;  %1054 = vmatpush.bf16.msrb.mxu3 %v1604_v56  ;;  %v1674_v24 = vld [vmem:[%s2575_s7 + $0x84] sm:$0xf] }
 0x13a   : > { %1036 = vmatpush.bf16.msrb.mxu2 %v1572_v61  ;;  %v1492_v30 = vor.u32 %v1674_v24, %v1489_v26 }
 0x13b   : > { %1715 = vmatpush.bf16.msra.mxu1 %v1608_v57 }
 0x13d   : > { %1003 = vmatpush.bf16.msrb.mxu0 %v1424_v36  ;;  %1055 = vmatpush.bf16.msrb.mxu3 %v1576_v63  ;;  %v1467_v36 = vld [vmem:[%s2575_s7 + $0x50] sm:$0xf]  ;;  %v2455_v63 = vld [vmem:[%s2576_s8] sm:$0x7f] }
 0x13e   : > { %1037 = vmatpush.bf16.msrb.mxu2 %v1544_v6  ;;  %v1468_v40 = vor.u32 %v1671_v37, %v1467_v36  ;;  %v2458_v0 = vperm.slane %v2455_v63, 2  ;;  %v2461_v1 = vperm.slane %v2455_v63, 3  ;;  %v2466_v6 = vperm.slane %v2455_v63, 0 }
 0x13f   : > { %1716 = vmatpush.bf16.msra.mxu1 %v1580_v2  ;;  %v2469_v7 = vperm.slane %v2455_v63, 1 }
 0x141   : > { %1072 = vmatpush.bf16.msra.mxu0 %v1636_v48  ;;  %1056 = vmatpush.bf16.msrb.mxu3 %v1548_v10 }
 0x142   : > { %1038 = vmatpush.bf16.msrb.mxu2 %v1516_v15 }
 0x143   : > { %1717 = vmatpush.bf16.msra.mxu1 %v1552_v11 }
 0x145   : > { %1073 = vmatpush.bf16.msra.mxu0 %v1608_v57  ;;  %1057 = vmatpush.bf16.msrb.mxu3 %v1520_v20 }
 0x146   : > { %1039 = vmatpush.bf16.msrb.mxu2 %v1488_v25 }
 0x147   : > { %1718 = vmatpush.bf16.msra.mxu1 %v1524_v21 }
 0x149   : > { %1074 = vmatpush.bf16.msra.mxu0 %v1580_v2  ;;  %1058 = vmatpush.bf16.msrb.mxu3 %v1492_v30 }
 0x14a   : > { %1040 = vmatpush.bf16.msrb.mxu2 %v1460_v38 }
 0x14b   : > { %1719 = vmatpush.bf16.msra.mxu1 %v1496_v31 }
 0x14d   : > { %1075 = vmatpush.bf16.msra.mxu0 %v1552_v11  ;;  %1059 = vmatpush.bf16.msrb.mxu3 %v1464_v39 }
 0x14e   : > { %1041 = vmatpush.bf16.msrb.mxu2 %v1432_v50 }
 0x14f   : > { %1720 = vmatpush.bf16.msra.mxu1 %v1468_v40 }
 0x151   : > { %1076 = vmatpush.bf16.msra.mxu0 %v1524_v21  ;;  %1060 = vmatpush.bf16.msrb.mxu3 %v1436_v51 }
 0x153   : > { %1721 = vmatpush.bf16.msra.mxu1 %v1440_v52 }
 0x155   : > { %1077 = vmatpush.bf16.msra.mxu0 %v1496_v31 }
 0x159   : > { %1078 = vmatpush.bf16.msra.mxu0 %v1468_v40 }
 0x15d   : > { %1079 = vmatpush.bf16.msra.mxu0 %v1440_v52 }
 0x1a5   : > { %v574_v19 = vpop.f32.mrf.mxu1 }
 0x1a6   : > { %v575_v44 = vadd.f32 %v1773_v29, %v574_v19 }
 0x1a8   : > { %v584_v53 = vmax.f32 %v575_v44, 0.0 }
 0x1ad   : > { %v576_v48 = vpop.f32.mrf.mxu1 }
 0x1ae   : > { %v577_v49 = vadd.f32 %v1773_v29, %v576_v48 }
 0x1b0   : > { %v585_v54 = vmax.f32 %v577_v49, 0.0 }
 0x1b2   : > { %v588_v55 = vpack.c.bf16 %v585_v54, %v584_v53 }
 0x1b4   : > { %966 = vmatmul.bf16.vlgmr.msra.gmra.mxu2 %v588_v55  ;;  %985 = vmatmul.bf16.vlgmr.msra.gmra.mxu3 %v588_v55 }
 0x1b5   : > { %1004 = vmatmul.bf16.vlgmr.msrb.gmra.mxu0 %v588_v55  ;;  %1023 = vmatmul.bf16.vlgmr.msrb.gmra.mxu1 %v588_v55  ;;  %v579_v56 = vpop.f32.mrf.mxu1 }
 0x1b6   : > { %v580_v57 = vadd.f32 %v1773_v29, %v579_v56 }
 0x1b8   : > { %v586_v60 = vmax.f32 %v580_v57, 0.0 }
 0x1bd   : > { %v581_v58 = vpop.f32.mrf.mxu1 }
 0x1be   : > { %v582_v59 = vadd.f32 %v1773_v29, %v581_v58 }
 0x1c0   : > { %v587_v61 = vmax.f32 %v582_v59, 0.0 }
 0x1c2   : > { %v589_v62 = vpack.c.bf16 %v587_v61, %v586_v60 }
 0x1c4   : > { %971 = vmatmul.bf16.gmra.mxu2 %v589_v62  ;;  %990 = vmatmul.bf16.gmra.mxu3 %v589_v62 }
 0x1c5   : > { %1009 = vmatmul.bf16.gmra.mxu0 %v589_v62  ;;  %1028 = vmatmul.bf16.gmra.mxu1 %v589_v62 }
 0x1d4   : > { %1042 = vmatmul.bf16.vlgmr.msrb.gmra.mxu2 %v588_v55  ;;  %1061 = vmatmul.bf16.vlgmr.msrb.gmra.mxu3 %v588_v55 }
 0x1d5   : > { %1080 = vmatmul.bf16.vlgmr.msra.gmra.mxu0 %v588_v55  ;;  %1085 = vmatmul.bf16.vlgmr.msra.gmra.mxu1 %v589_v62 }
 0x1e4   : > { %1047 = vmatmul.bf16.gmra.mxu2 %v589_v62  ;;  %1066 = vmatmul.bf16.gmra.mxu3 %v589_v62 }
 0x232   : > { %v1005_v2 = vpop.f32.mrf.mxu0  ;;  %v1024_v3 = vpop.f32.mrf.mxu1 }
 0x233   : > { %v1006_v4 = vadd.f32 %v1005_v2, %v2458_v0  ;;  %v1025_v5 = vadd.f32 %v1024_v3, %v2461_v1 }
 0x235   : > { %v1093_v8 = vsub.f32 0.0, %v1006_v4  ;;  %v1094_v9 = vsub.f32 0.0, %v1025_v5 }
 0x237   : > { %v1123_v10 = vmul.f32 1.442695, %v1093_v8  ;;  %v1125_v11 = vmul.f32 1.442695, %v1094_v9  ;;  %v967_v12 = vpop.f32.mrf.mxu2  ;;  %v986_v13 = vpop.f32.mrf.mxu3 }
 0x238   : > { %v968_v14 = vadd.f32 %v967_v12, %v2466_v6  ;;  %v987_v15 = vadd.f32 %v986_v13, %v2469_v7 }
 0x239   : > { %1774 = vpow2.f32 %v1123_v10 }
 0x23a   : > { %1776 = vpow2.f32 %v1125_v11  ;;  %v1091_v16 = vsub.f32 0.0, %v968_v14  ;;  %v1092_v17 = vsub.f32 0.0, %v987_v15  ;;  %v1007_v18 = vpop.f32.mrf.mxu0  ;;  %v1026_v19 = vpop.f32.mrf.mxu1 }
 0x23b   : > { %v1008_v20 = vadd.f32 %v1007_v18, %v2458_v0  ;;  %v1027_v21 = vadd.f32 %v1026_v19, %v2461_v1 }
 0x23c   : > { %v1119_v22 = vmul.f32 1.442695, %v1091_v16  ;;  %v1121_v23 = vmul.f32 1.442695, %v1092_v17 }
 0x23d   : > { %v1100_v24 = vsub.f32 0.0, %v1008_v20  ;;  %v1101_v25 = vsub.f32 0.0, %v1027_v21 }
 0x23e   : > { %1778 = vpow2.f32 %v1119_v22 }
 0x23f   : > { %v1775_v26 = vpop.eup %1774  ;;  %1780 = vpow2.f32 %v1121_v23  ;;  %v1137_v27 = vmul.f32 1.442695, %v1100_v24  ;;  %v969_v28 = vpop.f32.mrf.mxu2  ;;  %v1139_v32 = vmul.f32 1.442695, %v1101_v25 }
 0x240   : > { %v988_v29 = vpop.f32.mrf.mxu3  ;;  %v1777_v30 = vpop.eup %1776  ;;  %v1177_v31 = vadd.f32 1.0, %v1775_v26  ;;  %v970_v33 = vadd.f32 %v969_v28, %v2466_v6  ;;  %v2499_v28 = vperm.slane %v2455_v63, 4 }
 0x241   : > { %v989_v34 = vadd.f32 %v988_v29, %v2469_v7  ;;  %v1178_v35 = vadd.f32 1.0, %v1777_v30  ;;  %1782 = vpow2.f32 %v1137_v27  ;;  %v2502_v29 = vperm.slane %v2455_v63, 5 }
 0x242   : > { %1784 = vrcp.f32 %v1177_v31  ;;  %v1098_v36 = vsub.f32 0.0, %v970_v33  ;;  %v1010_v38 = vpop.f32.mrf.mxu0  ;;  %v1029_v39 = vpop.f32.mrf.mxu1 }
 0x243   : > { %v1099_v37 = vsub.f32 0.0, %v989_v34  ;;  %1786 = vrcp.f32 %v1178_v35  ;;  %v1011_v40 = vadd.f32 %v1010_v38, %v2458_v0  ;;  %v1030_v41 = vadd.f32 %v1029_v39, %v2461_v1 }
 0x244   : > { %v1779_v42 = vpop.eup %1778  ;;  %1788 = vpow2.f32 %v1139_v32  ;;  %v1133_v43 = vmul.f32 1.442695, %v1098_v36 }
 0x245   : > { %v1781_v44 = vpop.eup %1780  ;;  %v1175_v45 = vadd.f32 1.0, %v1779_v42  ;;  %v1135_v46 = vmul.f32 1.442695, %v1099_v37  ;;  %v1107_v47 = vsub.f32 0.0, %v1011_v40  ;;  %v1108_v48 = vsub.f32 0.0, %v1030_v41 }
 0x246   : > { %v1176_v49 = vadd.f32 1.0, %v1781_v44  ;;  %1790 = vpow2.f32 %v1133_v43 }
 0x247   : > { %v1783_v50 = vpop.eup %1782  ;;  %1792 = vrcp.f32 %v1175_v45  ;;  %v1151_v51 = vmul.f32 1.442695, %v1107_v47  ;;  %v1153_v52 = vmul.f32 1.442695, %v1108_v48  ;;  %v972_v53 = vpop.f32.mrf.mxu2 }
 0x248   : > { %v991_v54 = vpop.f32.mrf.mxu3  ;;  %v1785_v55 = vpop.eup %1784  ;;  %1794 = vrcp.f32 %v1176_v49  ;;  %v1184_v56 = vadd.f32 1.0, %v1783_v50  ;;  %v973_v57 = vadd.f32 %v972_v53, %v2466_v6 }
 0x249   : > { %v992_v58 = vadd.f32 %v991_v54, %v2469_v7  ;;  %v1787_v59 = vpop.eup %1786  ;;  %1796 = vpow2.f32 %v1135_v46 }
 0x24a   : > { %v1789_v60 = vpop.eup %1788  ;;  %v1232_v61 = vpack.c.bf16 %v1787_v59, %v1785_v55  ;;  %1798 = vrcp.f32 %v1184_v56  ;;  %v1105_v62 = vsub.f32 0.0, %v973_v57  ;;  %v1012_v3 = vpop.f32.mrf.mxu0 }
 0x24b   : > { %v1106_v2 = vsub.f32 0.0, %v992_v58  ;;  %v1031_v4 = vpop.f32.mrf.mxu1  ;;  %v1185_v5 = vadd.f32 1.0, %v1789_v60  ;;  %1800 = vpow2.f32 %v1151_v51  ;;  %v1013_v8 = vadd.f32 %v1012_v3, %v2458_v0 }
 0x24c   : > { %v1032_v9 = vadd.f32 %v1031_v4, %v2461_v1  ;;  %v1791_v10 = vpop.eup %1790  ;;  %1248 = vst [vmem:[%s2489_s14 + $0x8] sm:$0xff] %v1232_v61  ;;  %1802 = vpow2.f32 %v1153_v52  ;;  %v1147_v11 = vmul.f32 1.442695, %v1105_v62  ;;  %v2493_v0 = vperm.slane %v2455_v63, 6 }
 0x24d   : > { %v1149_v12 = vmul.f32 1.442695, %v1106_v2  ;;  %v1793_v13 = vpop.eup %1792  ;;  %1804 = vrcp.f32 %v1185_v5  ;;  %v1182_v14 = vadd.f32 1.0, %v1791_v10  ;;  %v1114_v15 = vsub.f32 0.0, %v1013_v8 }
 0x24e   : > { %v1115_v16 = vsub.f32 0.0, %v1032_v9  ;;  %v1795_v17 = vpop.eup %1794  ;;  %1806 = vpow2.f32 %v1147_v11 }
 0x24f   : > { %v1797_v1 = vpop.eup %1796  ;;  %v1231_v18 = vpack.c.bf16 %v1795_v17, %v1793_v13  ;;  %1808 = vrcp.f32 %v1182_v14  ;;  %v1165_v19 = vmul.f32 1.442695, %v1114_v15  ;;  %v974_v21 = vpop.f32.mrf.mxu2 }
 0x250   : > { %v1167_v20 = vmul.f32 1.442695, %v1115_v16  ;;  %v993_v22 = vpop.f32.mrf.mxu3  ;;  %v1799_v23 = vpop.eup %1798  ;;  %v1183_v24 = vadd.f32 1.0, %v1797_v1  ;;  %1810 = vpow2.f32 %v1149_v12  ;;  %v975_v25 = vadd.f32 %v974_v21, %v2466_v6 }
 0x251   : > { %v994_v26 = vadd.f32 %v993_v22, %v2469_v7  ;;  %v1801_v27 = vpop.eup %1800  ;;  %1247 = vst [vmem:[%s2489_s14] sm:$0xff] %v1231_v18  ;;  %1812 = vpow2.f32 %v1165_v19 }
 0x252   : > { %v1803_v30 = vpop.eup %1802  ;;  %1814 = vrcp.f32 %v1183_v24  ;;  %v1191_v31 = vadd.f32 1.0, %v1801_v27  ;;  %v1112_v32 = vsub.f32 0.0, %v975_v25  ;;  %v1081_v34 = vpop.f32.mrf.mxu0 }
 0x253   : > { %v1113_v33 = vsub.f32 0.0, %v994_v26  ;;  %v1086_v35 = vpop.f32.mrf.mxu1  ;;  %v1805_v36 = vpop.eup %1804  ;;  %v1192_v6 = vadd.f32 1.0, %v1803_v30  ;;  %1816 = vpow2.f32 %v1167_v20  ;;  %v1082_v7 = vadd.f32 %v1081_v34, %v2493_v0 }
 0x254   : > { %v1087_v37 = vadd.f32 %v1086_v35, %v2493_v0  ;;  %v1807_v38 = vpop.eup %1806  ;;  %v1236_v39 = vpack.c.bf16 %v1805_v36, %v1799_v23  ;;  %1818 = vrcp.f32 %v1191_v31  ;;  %v1161_v63 = vmul.f32 1.442695, %v1112_v32 }
 0x255   : > { %v1163_v40 = vmul.f32 1.442695, %v1113_v33  ;;  %v1809_v41 = vpop.eup %1808  ;;  %1820 = vrcp.f32 %v1192_v6  ;;  %v1189_v42 = vadd.f32 1.0, %v1807_v38  ;;  %v1097_v43 = vsub.f32 0.0, %v1082_v7 }
 0x256   : > { %v1111_v44 = vsub.f32 0.0, %v1087_v37  ;;  %v1811_v45 = vpop.eup %1810  ;;  %1253 = vst [vmem:[%s2489_s14 + $0x24] sm:$0xff] %v1236_v39  ;;  %1822 = vpow2.f32 %v1161_v63 }
 0x257   : > { %v1813_v46 = vpop.eup %1812  ;;  %1824 = vrcp.f32 %v1189_v42  ;;  %v1190_v47 = vadd.f32 1.0, %v1811_v45  ;;  %v1131_v48 = vmul.f32 1.442695, %v1097_v43  ;;  %v1043_v49 = vpop.f32.mrf.mxu2 }
 0x258   : > { %v1062_v50 = vpop.f32.mrf.mxu3  ;;  %v1815_v51 = vpop.eup %1814  ;;  %v1198_v52 = vadd.f32 1.0, %v1813_v46  ;;  %1826 = vpow2.f32 %v1163_v40  ;;  %v1044_v53 = vadd.f32 %v1043_v49, %v2499_v28  ;;  %v1159_v57 = vmul.f32 1.442695, %v1111_v44 }
 0x259   : > { %v1063_v54 = vadd.f32 %v1062_v50, %v2502_v29  ;;  %v1817_v55 = vpop.eup %1816  ;;  %v1235_v56 = vpack.c.bf16 %v1815_v51, %v1809_v41  ;;  %1828 = vrcp.f32 %v1190_v47 }
 0x25a   : > { %v1819_v58 = vpop.eup %1818  ;;  %1830 = vrcp.f32 %v1198_v52  ;;  %v1199_v59 = vadd.f32 1.0, %v1817_v55  ;;  %v1095_v60 = vsub.f32 0.0, %v1044_v53  ;;  %v1083_v62 = vpop.f32.mrf.mxu0 }
 0x25b   : > { %v1096_v61 = vsub.f32 0.0, %v1063_v54  ;;  %v1088_v2 = vpop.f32.mrf.mxu1  ;;  %v1821_v3 = vpop.eup %1820  ;;  %1252 = vst [vmem:[%s2489_s14 + $0x1c] sm:$0xff] %v1235_v56  ;;  %1832 = vpow2.f32 %v1131_v48  ;;  %v1084_v4 = vadd.f32 %v1083_v62, %v2493_v0 }
 0x25c   : > { %v1089_v5 = vadd.f32 %v1088_v2, %v2493_v0  ;;  %v1823_v8 = vpop.eup %1822  ;;  %v1240_v9 = vpack.c.bf16 %v1821_v3, %v1819_v58  ;;  %1834 = vrcp.f32 %v1199_v59  ;;  %v1127_v10 = vmul.f32 1.442695, %v1095_v60 }
 0x25d   : > { %v1129_v11 = vmul.f32 1.442695, %v1096_v61  ;;  %v1825_v12 = vpop.eup %1824  ;;  %v1196_v13 = vadd.f32 1.0, %v1823_v8  ;;  %1836 = vpow2.f32 %v1159_v57  ;;  %v1104_v14 = vsub.f32 0.0, %v1084_v4 }
 0x25e   : > { %v1118_v15 = vsub.f32 0.0, %v1089_v5  ;;  %v1827_v16 = vpop.eup %1826  ;;  %1257 = vst [vmem:[%s2489_s14 + $0x40] sm:$0xff] %v1240_v9  ;;  %1838 = vpow2.f32 %v1127_v10 }
 0x25f   : > { %v1829_v17 = vpop.eup %1828  ;;  %1840 = vrcp.f32 %v1196_v13  ;;  %v1197_v1 = vadd.f32 1.0, %v1827_v16  ;;  %v1145_v18 = vmul.f32 1.442695, %v1104_v14  ;;  %v1045_v0 = vpop.f32.mrf.mxu2 }
 0x260   : > { %v1173_v19 = vmul.f32 1.442695, %v1118_v15  ;;  %v1064_v20 = vpop.f32.mrf.mxu3  ;;  %v1831_v21 = vpop.eup %1830  ;;  %v1239_v22 = vpack.c.bf16 %v1829_v17, %v1825_v12  ;;  %1842 = vpow2.f32 %v1129_v11  ;;  %v1046_v23 = vadd.f32 %v1045_v0, %v2499_v28 }
 0x261   : > { %v1065_v24 = vadd.f32 %v1064_v20, %v2502_v29  ;;  %v1833_v25 = vpop.eup %1832  ;;  %1844 = vrcp.f32 %v1197_v1 }
 0x262   : > { %v1835_v26 = vpop.eup %1834  ;;  %1256 = vst [vmem:[%s2489_s14 + $0x38] sm:$0xff] %v1239_v22  ;;  %v1181_v27 = vadd.f32 1.0, %v1833_v25  ;;  %1846 = vpow2.f32 %v1145_v18  ;;  %v1102_v30 = vsub.f32 0.0, %v1046_v23 }
 0x263   : > { %v1103_v31 = vsub.f32 0.0, %v1065_v24  ;;  %v1837_v32 = vpop.eup %1836  ;;  %v1244_v33 = vpack.c.bf16 %v1835_v26, %v1831_v21  ;;  %1848 = vpow2.f32 %v1173_v19 }
 0x264   : > { %v1839_v34 = vpop.eup %1838  ;;  %1850 = vrcp.f32 %v1181_v27  ;;  %v1195_v35 = vadd.f32 1.0, %v1837_v32  ;;  %v1141_v36 = vmul.f32 1.442695, %v1102_v30 }
 0x265   : > { %v1841_v6 = vpop.eup %1840  ;;  %1261 = vst [vmem:[%s2489_s14 + $0x5c] sm:$0xff] %v1244_v33  ;;  %v1179_v7 = vadd.f32 1.0, %v1839_v34  ;;  %v1143_v38 = vmul.f32 1.442695, %v1103_v31 }
 0x266   : > { %v1843_v37 = vpop.eup %1842  ;;  %1852 = vrcp.f32 %v1195_v35 }
 0x267   : > { %v1845_v39 = vpop.eup %1844  ;;  %1854 = vrcp.f32 %v1179_v7  ;;  %v1180_v63 = vadd.f32 1.0, %v1843_v37  ;;  %v1048_v40 = vpop.f32.mrf.mxu2 }
 0x268   : > { %v1067_v41 = vpop.f32.mrf.mxu3  ;;  %v1847_v42 = vpop.eup %1846  ;;  %v1243_v43 = vpack.c.bf16 %v1845_v39, %v1841_v6  ;;  %1856 = vpow2.f32 %v1141_v36  ;;  %v1049_v44 = vadd.f32 %v1048_v40, %v2499_v28 }
 0x269   : > { %v1068_v45 = vadd.f32 %v1067_v41, %v2502_v29  ;;  %v1849_v46 = vpop.eup %1848  ;;  %1858 = vrcp.f32 %v1180_v63  ;;  %v1188_v47 = vadd.f32 1.0, %v1847_v42 }
 0x26a   : > { %v1851_v48 = vpop.eup %1850  ;;  %1260 = vst [vmem:[%s2489_s14 + $0x54] sm:$0xff] %v1243_v43  ;;  %v1202_v49 = vadd.f32 1.0, %v1849_v46  ;;  %1860 = vpow2.f32 %v1143_v38  ;;  %v1109_v50 = vsub.f32 0.0, %v1049_v44 }
 0x26b   : > { %v1110_v51 = vsub.f32 0.0, %v1068_v45  ;;  %v1234_v52 = vpack.c.bf16 %v1851_v48, %v1851_v48  ;;  %1862 = vrcp.f32 %v1188_v47 }
 0x26c   : > { %v1853_v53 = vpop.eup %1852  ;;  %1864 = vrcp.f32 %v1202_v49  ;;  %v1155_v54 = vmul.f32 1.442695, %v1109_v50 }
 0x26d   : > { %v1157_v55 = vmul.f32 1.442695, %v1110_v51  ;;  %v1855_v56 = vpop.eup %1854  ;;  %1251 = vst.msk [vmem:[%s2489_s14 + $0x18] sm:$0xf] %vm1250_vm0, %v1234_v52  ;;  %v1242_v57 = vpack.c.bf16 %v1853_v53, %v1853_v53 }
 0x26e   : > { %v1857_v58 = vpop.eup %1856  ;;  %1866 = vpow2.f32 %v1155_v54 }
 0x26f   : > { %v1859_v59 = vpop.eup %1858  ;;  %1259 = vst.msk [vmem:[%s2489_s14 + $0x50] sm:$0xf] %vm1250_vm0, %v1242_v57  ;;  %v1186_v60 = vadd.f32 1.0, %v1857_v58  ;;  %1868 = vpow2.f32 %v1157_v55  ;;  %v1050_v61 = vpop.f32.mrf.mxu2 }
 0x270   : > { %v1069_v62 = vpop.f32.mrf.mxu3  ;;  %v1861_v2 = vpop.eup %1860  ;;  %v1233_v3 = vpack.c.bf16 %v1859_v59, %v1855_v56  ;;  %v1051_v4 = vadd.f32 %v1050_v61, %v2499_v28 }
 0x271   : > { %v1070_v5 = vadd.f32 %v1069_v62, %v2502_v29  ;;  %v1863_v8 = vpop.eup %1862  ;;  %1870 = vrcp.f32 %v1186_v60  ;;  %v1187_v9 = vadd.f32 1.0, %v1861_v2 }
 0x272   : > { %v1865_v10 = vpop.eup %1864  ;;  %1249 = vst [vmem:[%s2489_s14 + $0x10] sm:$0xff] %v1233_v3  ;;  %v1238_v11 = vpack.c.bf16 %v1863_v8, %v1863_v8  ;;  %v1116_v12 = vsub.f32 0.0, %v1051_v4 }
 0x273   : > { %v1117_v13 = vsub.f32 0.0, %v1070_v5  ;;  %v1246_v14 = vpack.c.bf16 %v1865_v10, %v1865_v10  ;;  %1872 = vrcp.f32 %v1187_v9 }
 0x274   : > { %v1867_v15 = vpop.eup %1866  ;;  %1255 = vst.msk [vmem:[%s2489_s14 + $0x34] sm:$0xf] %vm1250_vm0, %v1238_v11  ;;  %v1169_v16 = vmul.f32 1.442695, %v1116_v12 }
 0x275   : > { %v1869_v17 = vpop.eup %1868  ;;  %1263 = vst.msk [vmem:[%s2489_s14 + $0x6c] sm:$0xf] %vm1250_vm0, %v1246_v14  ;;  %v1193_v28 = vadd.f32 1.0, %v1867_v15  ;;  %v1171_v29 = vmul.f32 1.442695, %v1117_v13 }
 0x276   : > { %v1194_v1 = vadd.f32 1.0, %v1869_v17  ;;  %1874 = vpow2.f32 %v1169_v16 }
 0x277   : > { %v1871_v18 = vpop.eup %1870  ;;  %1876 = vrcp.f32 %v1193_v28 }
 0x278   : > { %1878 = vrcp.f32 %v1194_v1 }
 0x279   : > { %v1873_v19 = vpop.eup %1872  ;;  %1880 = vpow2.f32 %v1171_v29 }
 0x27a   : > { %v1237_v0 = vpack.c.bf16 %v1873_v19, %v1871_v18 }
 0x27c   : > { %v1875_v20 = vpop.eup %1874  ;;  %1254 = vst [vmem:[%s2489_s14 + $0x2c] sm:$0xff] %v1237_v0 }
 0x27d   : > { %v1877_v21 = vpop.eup %1876  ;;  %v1200_v22 = vadd.f32 1.0, %v1875_v20 }
 0x27e   : > { %v1879_v23 = vpop.eup %1878 }
 0x27f   : > { %v1881_v24 = vpop.eup %1880  ;;  %v1241_v25 = vpack.c.bf16 %v1879_v23, %v1877_v21  ;;  %1882 = vrcp.f32 %v1200_v22 }
 0x280   : > { %v1201_v26 = vadd.f32 1.0, %v1881_v24 }
 0x281   : > { %1258 = vst [vmem:[%s2489_s14 + $0x48] sm:$0xff] %v1241_v25 }
 0x282   : > { %1884 = vrcp.f32 %v1201_v26 }
 0x285   : > { %v1883_v27 = vpop.eup %1882 }
 0x288   : > { %v1885_v30 = vpop.eup %1884 }
 0x289   : > { %v1245_v31 = vpack.c.bf16 %v1885_v30, %v1883_v27 }
 0x28b   : > { %1262 = vst [vmem:[%s2489_s14 + $0x64] sm:$0xff] %v1245_v31 }
 0x28c   : > { %1913 = shalt.err (!%p1910_p3)
}
 0x28d   : > { %s1952_s28 = smov 448   ;;  %s1953_s14 = smov 28  }
 0x28e   : > { %1724 = dma.vmem_to_hbm [thread:$0]  (%p2042_p5), %s1279_s23, 1792, %s1281_s24, %s1265_s13, %s1952_s28, %s1952_s28, %s1953_s14  }
 0x28f PF: > { %p1730_p4 = scmp.ge.s32.totalorder %s1948_s12, 2  ;;  %s1295_s21 = sand.u32 1, %s1936_s30  }
 0x290   : > { %s1296_s27 = scalar_lea.sflag [#allocation3], %s1295_s21 }
 0x291   : > { %p1727_p7 = pnand %p1730_p4, %p2046_p6 }
 0x293   : > { %p1728_p8 = pneg %p1727_p7 }
 0x295   : > { %1931 = dma.done.wait (%p1728_p8), %s1296_s27, 1792  }
 0x296   : > { %1933 = vsyncadd (%p1728_p8), %s1296_s27, 4294965504  ;;  %p19_p9 = scmp.ge.s32.totalorder %s2029_s15, 4   ;;  %s2580_s30 = smov %s1940_s10 }
 0x297   : > { %s2581_s10 = smov %s1944_s11  ;;  %s2582_s11 = smov %s2040_s18 }
 0x298   : > { %s2583_s12 = smov %s2029_s15  ;;  %21 = sbr.rel (!%p19_p9) target bundleno = 3 (0x3), region = 91 }
 0x29d   :  { %1302 = vsyncpa [#allocation3], 1 }
 0x29e   :  { %1304 = vsyncpa [#allocation3 + $0x1], 1 }

</bundles_post_ra>
